<compile_context>
chip_gen: v6e
topology: v6e:2x2x1
jax: 0.10.0
libtpu: 0.0.40
codegen_flags: <defaults>
</compile_context>

<pallas_src>
import functools

import jax
import jax.numpy as jnp
from jax.experimental import pallas as pl
from jax.experimental.pallas import tpu as pltpu


_LANE = 128      # vreg lane width / MXU tile width
_SUBLANE = 8     # f32 sublane count


def _round_up(n, m):
    return ((n + m - 1) // m) * m


# ----------------------------------------------------------------------------
# Kernel: fully fused SCORE forward (both MLP stages, 4 MXU matmuls)
#   eo  = relu(x  @ EW1 + eb1) @ EW2 + eb2      (expert stage, lane-padded)
#   out = relu(eo @ SW1 + sb1) @ SW2 + sb2      (ensembler stage, lane-padded)
# Weights are bf16; accumulation, bias add and ReLU are f32.
# ----------------------------------------------------------------------------
def _score_kernel(x_ref, ew1_ref, eb1_ref, ew2_ref, eb2_ref,
                  sw1_ref, sb1_ref, sw2_ref, sb2_ref, o_ref):
    x = x_ref[...]

    # --- expert stage (all experts fused into one MLP) ---
    h = jnp.dot(x.astype(ew1_ref.dtype), ew1_ref[...],
                preferred_element_type=jnp.float32)
    h = jnp.maximum(h + eb1_ref[...], 0.0)
    eo = jnp.dot(h.astype(ew2_ref.dtype), ew2_ref[...],
                 preferred_element_type=jnp.float32) + eb2_ref[...]

    # --- ensembler stage (all ensemblers fused into one MLP) ---
    g = jnp.dot(eo.astype(sw1_ref.dtype), sw1_ref[...],
                preferred_element_type=jnp.float32)
    g = jnp.maximum(g + sb1_ref[...], 0.0)
    out = jnp.dot(g.astype(sw2_ref.dtype), sw2_ref[...],
                  preferred_element_type=jnp.float32) + sb2_ref[...]

    o_ref[...] = out.astype(o_ref.dtype)


def fused_score(x, ew1, eb1, ew2, eb2, sw1, sb1, sw2, sb2):
    """x:(B,D) f32; weights lane-padded (bf16), biases f32. Returns (B_pad,S_pad) f32."""
    B, D = x.shape
    TB = _LANE if B >= _LANE else _SUBLANE
    B_pad = _round_up(B, TB)
    if B_pad != B:
        x = jnp.pad(x, ((0, B_pad - B), (0, 0)))

    HE, E_pad = ew1.shape[1], ew2.shape[1]
    HS, S_pad = sw1.shape[1], sw2.shape[1]

    flops = 2 * B_pad * (D * HE + HE * E_pad + E_pad * HS + HS * S_pad)
    bytes_accessed = (B_pad * D * 4 + B_pad * S_pad * 4
                      + sum(int(a.size) * a.dtype.itemsize
                            for a in (ew1, eb1, ew2, eb2, sw1, sb1, sw2, sb2)))

    const = lambda shape: pl.BlockSpec(shape, lambda i: (0,) * len(shape))

    return pl.pallas_call(
        _score_kernel,
        out_shape=jax.ShapeDtypeStruct((B_pad, S_pad), jnp.float32),
        grid_spec=pltpu.PrefetchScalarGridSpec(
            num_scalar_prefetch=0,
            grid=(B_pad // TB,),                      # batch streams; weights resident
            in_specs=[
                pl.BlockSpec((TB, D), lambda i: (i, 0)),
                const(ew1.shape), const(eb1.shape),
                const(ew2.shape), const(eb2.shape),
                const(sw1.shape), const(sb1.shape),
                const(sw2.shape), const(sb2.shape),
            ],
            out_specs=pl.BlockSpec((TB, S_pad), lambda i: (i, 0)),
        ),
        compiler_params=pltpu.CompilerParams(
            dimension_semantics=("parallel",)),        # v7x: shard batch over 2 TCs
        cost_estimate=pl.CostEstimate(flops=flops, transcendentals=0,
                                      bytes_accessed=bytes_accessed),
    )(x, ew1, eb1, ew2, eb2, sw1, sb1, sw2, sb2)


# ----------------------------------------------------------------------------
# Deterministic synthetic parameters (mirrors nn.Linear default init)
# ----------------------------------------------------------------------------
def _linear_params(key, fan_in, fan_out):
    kw, kb = jax.random.split(key)
    bound = 1.0 / jnp.sqrt(fan_in)
    w = jax.random.uniform(kw, (fan_in, fan_out), jnp.float32, -bound, bound)
    b = jax.random.uniform(kb, (1, fan_out), jnp.float32, -bound, bound)
    return w, b


def _block_diag(mats):
    # TODO(synk): at large expert/ensembler counts, replace the block-diag matmul
    # with a per-expert grid axis so the MXU never multiplies the zero blocks.
    rows = sum(m.shape[0] for m in mats)
    cols = sum(m.shape[1] for m in mats)
    out = jnp.zeros((rows, cols), jnp.float32)
    r = c = 0
    for m in mats:
        out = out.at[r:r + m.shape[0], c:c + m.shape[1]].set(m)
        r += m.shape[0]
        c += m.shape[1]
    return out


class ScorePallas:
    """JAX/Pallas re-implementation of SCORE.forward (all ensemblers selected)."""

    def __init__(self, key, in_dim, expert_hidden, expert_out_sizes,
                 ens_hidden, ens_out_sizes, weight_dtype=jnp.bfloat16):
        keys = jax.random.split(key, 2 * (len(expert_out_sizes) + len(ens_out_sizes)))
        ki = iter(keys)

        # --- experts: Linear(in_dim, H) -> ReLU -> Linear(H, out_i) ---
        e_w1, e_b1, e_w2, e_b2 = [], [], [], []
        for out_i in expert_out_sizes:
            w1, b1 = _linear_params(next(ki), in_dim, expert_hidden)
            w2, b2 = _linear_params(next(ki), expert_hidden, out_i)
            e_w1.append(w1); e_b1.append(b1); e_w2.append(w2); e_b2.append(b2)
        self.expert_params = list(zip(e_w1, e_b1, e_w2, e_b2))
        self.E_total = int(sum(expert_out_sizes))
        E_pad = _round_up(self.E_total, _LANE)

        exp_w1 = jnp.concatenate(e_w1, axis=1)            # (D, nE*H)
        exp_b1 = jnp.concatenate(e_b1, axis=1)            # (1, nE*H)
        exp_w2 = _block_diag(e_w2)                        # (nE*H, E_total)
        exp_b2 = jnp.concatenate(e_b2, axis=1)            # (1, E_total)
        # Lane-pad expert output (kernel intermediate) to 128 with ZERO columns:
        # padded columns of the intermediate are exactly 0.
        exp_w2 = jnp.pad(exp_w2, ((0, 0), (0, E_pad - self.E_total)))
        exp_b2 = jnp.pad(exp_b2, ((0, 0), (0, E_pad - self.E_total)))

        # --- ensemblers: Linear(E_total, He) -> ReLU -> Linear(He, out_j) ---
        s_w1, s_b1, s_w2, s_b2 = [], [], [], []
        for out_j in ens_out_sizes:
            w1, b1 = _linear_params(next(ki), self.E_total, ens_hidden)
            w2, b2 = _linear_params(next(ki), ens_hidden, out_j)
            s_w1.append(w1); s_b1.append(b1); s_w2.append(w2); s_b2.append(b2)
        self.ensembler_params = list(zip(s_w1, s_b1, s_w2, s_b2))
        self.S_total = int(sum(ens_out_sizes))
        S_pad = _round_up(self.S_total, _LANE)

        ens_w1 = jnp.concatenate(s_w1, axis=1)            # (E_total, nS*He)
        ens_b1 = jnp.concatenate(s_b1, axis=1)
        ens_w2 = _block_diag(s_w2)                        # (nS*He, S_total)
        ens_b2 = jnp.concatenate(s_b2, axis=1)
        # Zero rows for the zero-valued padded intermediate columns (math unchanged).
        ens_w1 = jnp.pad(ens_w1, ((0, E_pad - self.E_total), (0, 0)))
        # Lane-pad the final output to 128 with ZERO columns (sliced off in forward).
        ens_w2 = jnp.pad(ens_w2, ((0, 0), (0, S_pad - self.S_total)))
        ens_b2 = jnp.pad(ens_b2, ((0, 0), (0, S_pad - self.S_total)))

        # MXU operands in bf16 (f32 accumulate in-kernel); biases stay f32.
        self.exp_w1 = exp_w1.astype(weight_dtype)
        self.exp_w2 = exp_w2.astype(weight_dtype)
        self.ens_w1 = ens_w1.astype(weight_dtype)
        self.ens_w2 = ens_w2.astype(weight_dtype)
        self.exp_b1, self.exp_b2 = exp_b1, exp_b2
        self.ens_b1, self.ens_b2 = ens_b1, ens_b2

    # TODO(synk): `selected_ensemblers` subsets are not implemented; the kernel
    # always evaluates all ensemblers (the torch default argument).
    @functools.partial(jax.jit, static_argnums=0)
    def forward(self, x):
        B = x.shape[0]
        out = fused_score(x, self.exp_w1, self.exp_b1, self.exp_w2, self.exp_b2,
                          self.ens_w1, self.ens_b1, self.ens_w2, self.ens_b2)
        return out[:B, :self.S_total]          # strip batch/lane padding

    # pure-JAX f32 reference: per-expert / per-ensembler loop, mirrors torch forward
    def reference(self, x):
        eo = []
        for (w1, b1, w2, b2) in self.expert_params:
            h = jnp.maximum(x @ w1 + b1, 0.0)
            eo.append(h @ w2 + b2)
        expert_outputs = jnp.concatenate(eo, axis=1)
        so = []
        for (w1, b1, w2, b2) in self.ensembler_params:
            h = jnp.maximum(expert_outputs @ w1 + b1, 0.0)
            so.append(h @ w2 + b2)
        return jnp.concatenate(so, axis=1)


if __name__ == "__main__":
    key = jax.random.PRNGKey(0)
    k_param, k_x = jax.random.split(key)

    # small, module-consistent shapes
    B, D_in = 4, 32
    expert_hidden, expert_out_sizes = 16, [4, 6, 2]   # 3 experts, E_total = 12
    ens_hidden, ens_out_sizes = 8, [3, 5]             # 2 ensemblers, S_total = 8

    model = ScorePallas(k_param, D_in, expert_hidden, expert_out_sizes,
                        ens_hidden, ens_out_sizes)

    x = jax.random.normal(k_x, (B, D_in), jnp.float32)

    out = jax.block_until_ready(model.forward(x))
    ref = model.reference(x)

    assert out.shape == (B, model.S_total)
    # bf16 MXU operands (f32 accumulate) vs f32 reference -> relaxed tolerance
    assert jnp.allclose(out, ref, atol=3e-2, rtol=3e-2), "mismatch vs reference"

    print("KERNEL_OK")
</pallas_src>

<mosaic_0001>
module attributes {stable_mosaic.version = 11 : i64} {
  func.func @_score_kernel(%arg0: i32, %arg1: memref<8x32xf32, #tpu.memory_space<vmem>>, %arg2: memref<32x48xbf16, #tpu.memory_space<vmem>>, %arg3: memref<1x48xf32, #tpu.memory_space<vmem>>, %arg4: memref<48x128xbf16, #tpu.memory_space<vmem>>, %arg5: memref<1x128xf32, #tpu.memory_space<vmem>>, %arg6: memref<128x16xbf16, #tpu.memory_space<vmem>>, %arg7: memref<1x16xf32, #tpu.memory_space<vmem>>, %arg8: memref<16x128xbf16, #tpu.memory_space<vmem>>, %arg9: memref<1x128xf32, #tpu.memory_space<vmem>>, %arg10: memref<8x128xf32, #tpu.memory_space<vmem>>) attributes {dimension_semantics = [#tpu.dimension_semantics<parallel>], iteration_bounds = array<i64: 1>, scalar_prefetch = 0 : i64, scratch_operands = 0 : i64, tpu.core_type = #tpu.core_type<tc>, window_params = [{transform_indices = @transform_0, window_bounds = array<i64: 8, 32>}, {pipeline_mode = #tpu.pipeline_mode<synchronous>, transform_indices = @transform_1, window_bounds = array<i64: 32, 48>}, {pipeline_mode = #tpu.pipeline_mode<synchronous>, transform_indices = @transform_2, window_bounds = array<i64: 1, 48>}, {pipeline_mode = #tpu.pipeline_mode<synchronous>, transform_indices = @transform_3, window_bounds = array<i64: 48, 128>}, {pipeline_mode = #tpu.pipeline_mode<synchronous>, transform_indices = @transform_4, window_bounds = array<i64: 1, 128>}, {pipeline_mode = #tpu.pipeline_mode<synchronous>, transform_indices = @transform_5, window_bounds = array<i64: 128, 16>}, {pipeline_mode = #tpu.pipeline_mode<synchronous>, transform_indices = @transform_6, window_bounds = array<i64: 1, 16>}, {pipeline_mode = #tpu.pipeline_mode<synchronous>, transform_indices = @transform_7, window_bounds = array<i64: 16, 128>}, {pipeline_mode = #tpu.pipeline_mode<synchronous>, transform_indices = @transform_8, window_bounds = array<i64: 1, 128>}, {transform_indices = @transform_9, window_bounds = array<i64: 8, 128>}]} {
    %c0 = arith.constant 0 : index
    %c0_0 = arith.constant 0 : index
    %0 = vector.load %arg1[%c0, %c0_0] : memref<8x32xf32, #tpu.memory_space<vmem>>, vector<8x32xf32>
    %1 = arith.truncf %0 : vector<8x32xf32> to vector<8x32xbf16>
    %c0_1 = arith.constant 0 : index
    %c0_2 = arith.constant 0 : index
    %2 = vector.load %arg2[%c0_1, %c0_2] : memref<32x48xbf16, #tpu.memory_space<vmem>>, vector<32x48xbf16>
    %cst = arith.constant dense<0.000000e+00> : vector<8x48xf32>
    %3 = tpu.matmul %1, %2, %cst {dimension_numbers = #tpu.dot_dimension_numbers<[1], [0], [0], [1], [0, 0, 1, 1], [], []>} : vector<8x32xbf16>, vector<32x48xbf16>, vector<8x48xf32> -> vector<8x48xf32>
    %c0_3 = arith.constant 0 : index
    %c0_4 = arith.constant 0 : index
    %4 = vector.load %arg3[%c0_3, %c0_4] : memref<1x48xf32, #tpu.memory_space<vmem>>, vector<1x48xf32>
    %5 = vector.broadcast %4 : vector<1x48xf32> to vector<8x48xf32>
    %6 = arith.addf %3, %5 : vector<8x48xf32>
    %cst_5 = arith.constant 0.000000e+00 : f32
    %7 = vector.broadcast %cst_5 : f32 to vector<8x48xf32>
    %8 = arith.maximumf %6, %7 : vector<8x48xf32>
    %9 = arith.truncf %8 : vector<8x48xf32> to vector<8x48xbf16>
    %c0_6 = arith.constant 0 : index
    %c0_7 = arith.constant 0 : index
    %10 = vector.load %arg4[%c0_6, %c0_7] : memref<48x128xbf16, #tpu.memory_space<vmem>>, vector<48x128xbf16>
    %cst_8 = arith.constant dense<0.000000e+00> : vector<8x128xf32>
    %11 = tpu.matmul %9, %10, %cst_8 {dimension_numbers = #tpu.dot_dimension_numbers<[1], [0], [0], [1], [0, 0, 1, 1], [], []>} : vector<8x48xbf16>, vector<48x128xbf16>, vector<8x128xf32> -> vector<8x128xf32>
    %c0_9 = arith.constant 0 : index
    %c0_10 = arith.constant 0 : index
    %12 = vector.load %arg5[%c0_9, %c0_10] : memref<1x128xf32, #tpu.memory_space<vmem>>, vector<1x128xf32>
    %13 = vector.broadcast %12 : vector<1x128xf32> to vector<8x128xf32>
    %14 = arith.addf %11, %13 : vector<8x128xf32>
    %15 = arith.truncf %14 : vector<8x128xf32> to vector<8x128xbf16>
    %c0_11 = arith.constant 0 : index
    %c0_12 = arith.constant 0 : index
    %16 = vector.load %arg6[%c0_11, %c0_12] : memref<128x16xbf16, #tpu.memory_space<vmem>>, vector<128x16xbf16>
    %cst_13 = arith.constant dense<0.000000e+00> : vector<8x16xf32>
    %17 = tpu.matmul %15, %16, %cst_13 {dimension_numbers = #tpu.dot_dimension_numbers<[1], [0], [0], [1], [0, 0, 1, 1], [], []>} : vector<8x128xbf16>, vector<128x16xbf16>, vector<8x16xf32> -> vector<8x16xf32>
    %c0_14 = arith.constant 0 : index
    %c0_15 = arith.constant 0 : index
    %18 = vector.load %arg7[%c0_14, %c0_15] : memref<1x16xf32, #tpu.memory_space<vmem>>, vector<1x16xf32>
    %19 = vector.broadcast %18 : vector<1x16xf32> to vector<8x16xf32>
    %20 = arith.addf %17, %19 : vector<8x16xf32>
    %cst_16 = arith.constant 0.000000e+00 : f32
    %21 = vector.broadcast %cst_16 : f32 to vector<8x16xf32>
    %22 = arith.maximumf %20, %21 : vector<8x16xf32>
    %23 = arith.truncf %22 : vector<8x16xf32> to vector<8x16xbf16>
    %c0_17 = arith.constant 0 : index
    %c0_18 = arith.constant 0 : index
    %24 = vector.load %arg8[%c0_17, %c0_18] : memref<16x128xbf16, #tpu.memory_space<vmem>>, vector<16x128xbf16>
    %cst_19 = arith.constant dense<0.000000e+00> : vector<8x128xf32>
    %25 = tpu.matmul %23, %24, %cst_19 {dimension_numbers = #tpu.dot_dimension_numbers<[1], [0], [0], [1], [0, 0, 1, 1], [], []>} : vector<8x16xbf16>, vector<16x128xbf16>, vector<8x128xf32> -> vector<8x128xf32>
    %c0_20 = arith.constant 0 : index
    %c0_21 = arith.constant 0 : index
    %26 = vector.load %arg9[%c0_20, %c0_21] : memref<1x128xf32, #tpu.memory_space<vmem>>, vector<1x128xf32>
    %27 = vector.broadcast %26 : vector<1x128xf32> to vector<8x128xf32>
    %28 = arith.addf %25, %27 : vector<8x128xf32>
    %c0_22 = arith.constant 0 : index
    %c0_23 = arith.constant 0 : index
    %29 = vector.load %arg10[%c0_22, %c0_23] : memref<8x128xf32, #tpu.memory_space<vmem>>, vector<8x128xf32>
    tpu.vector_store %arg10[%c0_22, %c0_23], %28 {strides = array<i32>} : memref<8x128xf32, #tpu.memory_space<vmem>>, vector<8x128xf32>,
    return
  }
  func.func @transform_0(%arg0: i32) -> (i32, i32) {
    %c0_i32 = arith.constant 0 : i32
    %c0_i32_0 = arith.constant 0 : i32
    return %arg0, %c0_i32 : i32, i32
  }
  func.func @transform_1(%arg0: i32) -> (i32, i32) {
    %c0_i32 = arith.constant 0 : i32
    %c0_i32_0 = arith.constant 0 : i32
    %c0_i32_1 = arith.constant 0 : i32
    return %c0_i32, %c0_i32_0 : i32, i32
  }
  func.func @transform_2(%arg0: i32) -> (i32, i32) {
    %c0_i32 = arith.constant 0 : i32
    %c0_i32_0 = arith.constant 0 : i32
    %c0_i32_1 = arith.constant 0 : i32
    return %c0_i32, %c0_i32_0 : i32, i32
  }
  func.func @transform_3(%arg0: i32) -> (i32, i32) {
    %c0_i32 = arith.constant 0 : i32
    %c0_i32_0 = arith.constant 0 : i32
    %c0_i32_1 = arith.constant 0 : i32
    return %c0_i32, %c0_i32_0 : i32, i32
  }
  func.func @transform_4(%arg0: i32) -> (i32, i32) {
    %c0_i32 = arith.constant 0 : i32
    %c0_i32_0 = arith.constant 0 : i32
    %c0_i32_1 = arith.constant 0 : i32
    return %c0_i32, %c0_i32_0 : i32, i32
  }
  func.func @transform_5(%arg0: i32) -> (i32, i32) {
    %c0_i32 = arith.constant 0 : i32
    %c0_i32_0 = arith.constant 0 : i32
    %c0_i32_1 = arith.constant 0 : i32
    return %c0_i32, %c0_i32_0 : i32, i32
  }
  func.func @transform_6(%arg0: i32) -> (i32, i32) {
    %c0_i32 = arith.constant 0 : i32
    %c0_i32_0 = arith.constant 0 : i32
    %c0_i32_1 = arith.constant 0 : i32
    return %c0_i32, %c0_i32_0 : i32, i32
  }
  func.func @transform_7(%arg0: i32) -> (i32, i32) {
    %c0_i32 = arith.constant 0 : i32
    %c0_i32_0 = arith.constant 0 : i32
    %c0_i32_1 = arith.constant 0 : i32
    return %c0_i32, %c0_i32_0 : i32, i32
  }
  func.func @transform_8(%arg0: i32) -> (i32, i32) {
    %c0_i32 = arith.constant 0 : i32
    %c0_i32_0 = arith.constant 0 : i32
    %c0_i32_1 = arith.constant 0 : i32
    return %c0_i32, %c0_i32_0 : i32, i32
  }
  func.func @transform_9(%arg0: i32) -> (i32, i32) {
    %c0_i32 = arith.constant 0 : i32
    %c0_i32_0 = arith.constant 0 : i32
    return %arg0, %c0_i32 : i32, i32
  }
}

</mosaic_0001>

<bundles_post_ra>
// kernel: forward.1
= control target key start
LH: loop header
LB: loop body
LE: loop exit
PB: predicated region body
PF: predicated region fallthrough
CT: control target
= control target key end

     0   :  { %14 = vsyncpa [#allocation3], 0  ;;  %s659_s0 = inlined_call_operand.vmem [shape: f32[8,32], index: 0, kind: input, shape index: {}]   ;;  %s660_s1 = inlined_call_operand.hbm [shape: bf16[32,48], index: 1, kind: input, shape index: {}]   ;;  %s661_s2 = inlined_call_operand.vmem [shape: f32[1,48], index: 2, kind: input, shape index: {}]   ;;  %s662_s3 = inlined_call_operand.hbm [shape: bf16[48,128], index: 3, kind: input, shape index: {}]   ;;  %s663_s4 = inlined_call_operand.vmem [shape: f32[1,128], index: 4, kind: input, shape index: {}]   ;;  %s664_s5 = inlined_call_operand.hbm [shape: bf16[128,16], index: 5, kind: input, shape index: {}]   ;;  %s665_s6 = inlined_call_operand.vmem [shape: f32[1,16], index: 6, kind: input, shape index: {}]   ;;  %s666_s7 = inlined_call_operand.vmem [shape: bf16[16,128], index: 7, kind: input, shape index: {}]   ;;  %s667_s8 = inlined_call_operand.vmem [shape: f32[1,128], index: 8, kind: input, shape index: {}]   ;;  %s668_s9 = inlined_call_operand.vmem [shape: f32[8,128], index: 9, kind: output, shape index: {}]  }
   0x1   :  { %15 = vsyncpa [#allocation5], 0  ;;  %s568_s30 = smov [#allocation4]   ;;  %s569_s11 = smov [#allocation2]  }
   0x2   :  { %s37_s10 = sshll.u32 %s568_s30, 4  ;;  %s23_s12 = sshll.u32 %s569_s11, 4  ;;  %s38_s10 = int_to_ptr.vmem [resolvable:$true] %s37_s10  ;;  %s24_s12 = int_to_ptr.vmem [resolvable:$true] %s23_s12 }
   0x3   :  { %s512_s13 = scalar_lea.vmem %s38_s10, 384  ;;  %p517_p1 = scmp.lt.s32.totalorder %s38_s10, %s38_s10 }
   0x4   :  { %p513_p0 = scmp.ne.s32.totalorder %s38_s10, %s512_s13  ;;  %p518_p2 = scmp.lt.s32.totalorder %s512_s13, %s512_s13 }
   0x6   :  { %p519_p3 = por %p518_p2, %p517_p1 }
   0x8   :  { %p520_p4 = pnand %p519_p3, %p513_p0 }
   0xa   :  { %523 = shalt.err (!%p520_p4)
}
   0xb   :  { %s570_s14 = smov 64   ;;  %s571_s15 = smov 4  }
   0xc   :  { %43 = dma.hbm_to_vmem [thread:$0]  %s662_s3, 384, %s38_s10, [#allocation5], %s570_s14, %s570_s14, %s571_s15  }
   0xd   :  { %s532_s18 = scalar_lea.vmem %s24_s12, 256  ;;  %p537_p6 = scmp.lt.s32.totalorder %s24_s12, %s24_s12 }
   0xe   :  { %p533_p5 = scmp.ne.s32.totalorder %s24_s12, %s532_s18  ;;  %p538_p7 = scmp.lt.s32.totalorder %s532_s18, %s532_s18 }
  0x10   :  { %p539_p8 = por %p538_p7, %p537_p6 }
  0x12   :  { %p540_p9 = pnand %p539_p8, %p533_p5 }
  0x14   :  { %543 = shalt.err (!%p540_p9)
}
  0x15   :  { %29 = dma.hbm_to_vmem [thread:$0]  %s660_s1, 256, %s24_s12, [#allocation3], %s570_s14, %s570_s14, %s571_s15  }
  0x16   :  { %s572_s21 = smov [#allocation6]  }
  0x17   :  { %s51_s22 = sshll.u32 %s572_s21, 4  ;;  %s52_s22 = int_to_ptr.vmem [resolvable:$true] %s51_s22 }
  0x18   :  { %s552_s23 = scalar_lea.vmem %s52_s22, 1024  ;;  %p557_p11 = scmp.lt.s32.totalorder %s52_s22, %s52_s22 }
  0x19   :  { %p553_p10 = scmp.ne.s32.totalorder %s52_s22, %s552_s23  ;;  %p558_p12 = scmp.lt.s32.totalorder %s552_s23, %s552_s23 }
  0x1b   :  { %p559_p13 = por %p558_p12, %p557_p11 }
  0x1d   :  { %p560_p0 = pnand %p559_p13, %p553_p10 }
  0x1f   :  { %563 = shalt.err (!%p560_p0)
}
  0x20   :  { %57 = dma.hbm_to_vmem [thread:$0]  %s664_s5, 1024, %s52_s22, [#allocation5], %s570_s14, %s570_s14, %s571_s15  }
  0x21   :  { %564 = dma.done.wait [#allocation3], 256  }
  0x22   :  { %565 = vsyncadd [#allocation3], 4294967040 }
  0x23   :  { %566 = dma.done.wait [#allocation5], 1408  }
  0x24   :  { %567 = vsyncadd [#allocation5], 4294965888  ;;  %v573_v0 = vmov 0.0   ;;  %vm574_vm0 = vmmov 0   ;;  %v490_v1 = vld [vmem:[#allocation2 + $0x8] sm:$0xff]   ;;  %v491_v2 = vld [vmem:[#allocation2] sm:$0xff]  }
  0x25   :  { %439 = vmatprep.subr.bf16.mxu1 %v573_v0  ;;  %443 = vmatprep.mubr.msk.bf16.mxu1 %vm574_vm0, %v573_v0  ;;  %v74_v3 = vld [vmem:[%s659_s0] sm:$0xff]  ;;  %vm99_vm1 = vcmask 261120   ;;  %v493_v6 = vld [vmem:[#allocation4 + $0x8] sm:$0xff]   ;;  %v494_v7 = vld [vmem:[#allocation4] sm:$0xff]   ;;  %vm176_vm2 = vcmask 392192   ;;  %vm349_vm3 = vcmask 130048  }
  0x26   :  { %457 = vmatprep.subr.bf16.mxu0 %v573_v0  ;;  %473 = vmatprep.mubr.msk.bf16.mxu0 %vm574_vm0, %v573_v0  ;;  %v492_v4 = vld [vmem:[#allocation4 + $0x10] sm:$0xff]   ;;  %v75_v5 = vpack.c.bf16 %v74_v3, %v74_v3  ;;  %v496_v9 = vld [vmem:[#allocation6 + $0x30] sm:$0xff]   ;;  %v497_v10 = vld [vmem:[#allocation6 + $0x28] sm:$0xff]  }
  0x27   :  { %440 = vmatpush3.bf16.msra.mxu1 %v490_v1  ;;  %v495_v8 = vld [vmem:[#allocation6 + $0x38] sm:$0xff]   ;;  %v498_v11 = vld [vmem:[#allocation6 + $0x20] sm:$0xff]   ;;  %v500_v13 = vld [vmem:[#allocation6 + $0x10] sm:$0xff]  }
  0x28   :  { %441 = vmatprep.subr.bf16.mxu1 %v573_v0  ;;  %458 = vmatpush3.bf16.msra.mxu0 %v495_v8  ;;  %v499_v12 = vld [vmem:[#allocation6 + $0x18] sm:$0xff]   ;;  %v501_v14 = vld [vmem:[#allocation6 + $0x8] sm:$0xff]   ;;  %v502_v23 = vld [vmem:[#allocation6] sm:$0xff]  }
  0x29   :  { %459 = vmatprep.subr.bf16.mxu0 %v573_v0  ;;  %v400_v15 = vld [vmem:[%s661_s2] ss:$0 sm:$0xff] }
  0x2a   :  { %v503_v24 = vld [vmem:[%s666_s7] sm:$0xff]  }
  0x2b   :  { %442 = vmatpush3.bf16.msra.mxu1 %v491_v2  ;;  %v404_v25 = vld [vmem:[%s663_s4] ss:$0 sm:$0xff] }
  0x2c   :  { %447 = vmatprep.subr.bf16.mxu1 %v573_v0  ;;  %460 = vmatpush3.bf16.msra.mxu0 %v496_v9  ;;  %v409_v32 = vld [vmem:[%s665_s6] ss:$0 sm:$0xff] }
  0x2d   :  { %461 = vmatprep.subr.bf16.mxu0 %v573_v0  ;;  %v418_v40 = vld [vmem:[%s667_s8] ss:$0 sm:$0xff] }
  0x2e   :  { %444 = vmatmul.mubr.msk.bf16.vlgmr.msra.gmra.mxu1 %vm99_vm1, %v75_v5 }
  0x2f   :  { %448 = vmatpush3.bf16.msra.mxu1 %v492_v4  ;;  %453 = vmatprep.mubr.msk.bf16.mxu1 %vm574_vm0, %v573_v0 }
  0x30   :  { %449 = vmatprep.subr.bf16.mxu1 %v573_v0  ;;  %462 = vmatpush3.bf16.msra.mxu0 %v497_v10 }
  0x31   :  { %463 = vmatprep.subr.bf16.mxu0 %v573_v0 }
  0x33   :  { %450 = vmatpush3.bf16.msra.mxu1 %v493_v6 }
  0x34   :  { %451 = vmatprep.subr.bf16.mxu1 %v573_v0  ;;  %464 = vmatpush3.bf16.msra.mxu0 %v498_v11 }
  0x35   :  { %465 = vmatprep.subr.bf16.mxu0 %v573_v0 }
  0x37   :  { %452 = vmatpush3.bf16.msra.mxu1 %v494_v7 }
  0x38   :  { %477 = vmatprep.subr.bf16.mxu1 %v573_v0  ;;  %466 = vmatpush3.bf16.msra.mxu0 %v499_v12 }
  0x39   :  { %467 = vmatprep.subr.bf16.mxu0 %v573_v0 }
  0x3c   :  { %468 = vmatpush3.bf16.msra.mxu0 %v500_v13 }
  0x3d   :  { %469 = vmatprep.subr.bf16.mxu0 %v573_v0 }
  0x40   :  { %470 = vmatpush3.bf16.msra.mxu0 %v501_v14 }
  0x41   :  { %471 = vmatprep.subr.bf16.mxu0 %v573_v0 }
  0x44   :  { %472 = vmatpush3.bf16.msra.mxu0 %v502_v23 }
  0xee   :  { %v137_v16 = vpop.f32.mrf.mxu1 }
  0xef   :  { %v138_v17 = vadd.f32 %v400_v15, %v137_v16 }
  0xf0   :  { %v445_v18 = vpop.f32.mrf.mxu1 }
  0xf1   :  { %v143_v19 = vmax.f32 %v138_v17, 0.0 }
  0xf2   :  { %v140_v20 = vpop.f32.mrf.mxu1 }
  0xf3   :  { %v144_v21 = vpack.c.bf16 %v143_v19, %v143_v19 }
  0xf4   :  { %v446_v22 = vpop.f32.mrf.mxu1 }
  0xf5   :  { %454 = vmatmul.mubr.msk.bf16.vlgmr.msra.gmra.mxu1 %vm176_vm2, %v144_v21 }
  0xf6   :  { %479 = vmatprep.mubr.msk.bf16.mxu1 %vm574_vm0, %v573_v0  ;;  %478 = vmatpush3.bf16.msra.mxu1 %v503_v24 }
 0x1b5   :  { %v214_v26 = vpop.f32.mrf.mxu1 }
 0x1b6   :  { %v215_v27 = vadd.f32 %v404_v25, %v214_v26 }
 0x1b7   :  { %v455_v28 = vpop.f32.mrf.mxu1 }
 0x1b8   :  { %v220_v29 = vpack.c.bf16 %v215_v27, %v215_v27 }
 0x1b9   :  { %v217_v30 = vpop.f32.mrf.mxu1 }
 0x1ba   :  { %474 = vmatmul.mubr.bf16.vlgmr.msra.gmra.mxu0 %v220_v29 }
 0x1bb   :  { %v456_v31 = vpop.f32.mrf.mxu1 }
 0x27a   :  { %v326_v33 = vpop.f32.mrf.mxu0 }
 0x27b   :  { %v327_v34 = vadd.f32 %v409_v32, %v326_v33 }
 0x27c   :  { %v475_v35 = vpop.f32.mrf.mxu0 }
 0x27d   :  { %v332_v36 = vmax.f32 %v327_v34, 0.0 }
 0x27e   :  { %v329_v37 = vpop.f32.mrf.mxu0 }
 0x27f   :  { %v333_v38 = vpack.c.bf16 %v332_v36, %v332_v36 }
 0x280   :  { %v476_v39 = vpop.f32.mrf.mxu0 }
 0x281   :  { %480 = vmatmul.mubr.msk.bf16.vlgmr.msra.gmra.mxu1 %vm349_vm3, %v333_v38 }
 0x341   :  { %v387_v41 = vpop.f32.mrf.mxu1 }
 0x342   :  { %v388_v42 = vadd.f32 %v418_v40, %v387_v41 }
 0x343   :  { %v481_v43 = vpop.f32.mrf.mxu1 }
 0x344   :  { %393 = vst [vmem:[%s668_s9] sm:$0xff] %v388_v42 }
 0x345   :  { %v390_v44 = vpop.f32.mrf.mxu1 }
 0x347   :  { %v482_v45 = vpop.f32.mrf.mxu1 }
 0x348   :  { %398 = vsyncpa [#allocation3], 1 }
 0x349   :  { %399 = vsyncpa [#allocation5], 1 }

</bundles_post_ra>
